<compile_context>
chip_gen: v7x
topology: tpu7x:2x2x1
jax: 0.10.0
libtpu: 0.0.40
codegen_flags: <defaults>
</compile_context>

<pallas_src>
import numpy as np
import jax
import jax.numpy as jnp
from jax.experimental import pallas as pl
from jax.experimental.pallas import tpu as pltpu

# Irreps "4x0e + 2x1o + 1x2e": (multiplicity, l). Parity irrelevant for forward.
IRREPS = ((4, 0), (2, 1), (1, 2))
FEATURE_DIM = sum(mul * (2 * l + 1) for mul, l in IRREPS)   # 15
NUM_IRREPS = sum(mul for mul, _ in IRREPS)                  # 7


def _site_segment_matrix():
    """One-hot (FEATURE_DIM, NUM_IRREPS): S[f, i] = 1 iff feature f belongs to instance i."""
    S = np.zeros((FEATURE_DIM, NUM_IRREPS), np.float32)
    col = inst = 0
    for mul, l in IRREPS:
        d = 2 * l + 1
        for _ in range(mul):
            S[col:col + d, inst] = 1.0
            col += d
            inst += 1
    return S


def _packed_matrices(p):
    """Block-diagonal reduce/expand matrices for p sites packed per lane-row."""
    S = _site_segment_matrix()
    red = np.kron(np.eye(p, dtype=np.float32), S)     # (p*15, p*7)
    exp = np.ascontiguousarray(red.T)                 # (p*7, p*15)
    return jnp.asarray(red), jnp.asarray(exp)


def _norm_act_kernel(b_ref, red_ref, exp_ref, x_ref, o_ref):
    """b_ref:   (1, p*7)      biases tiled per packed site (lane-dense, resident)
       red_ref: (p*15, p*7)   one-hot segment-reduce matrix (resident)
       exp_ref: (p*7, p*15)   one-hot segment-expand matrix (resident)
       x_ref/o_ref: (tr, p*15) packed feature block (p sites per sublane row)."""
    x = x_ref[...].astype(jnp.float32)                       # (tr, p*15)
    x2 = x * x

    # Per-instance squared norms via one-hot matmul on the idle MXU.
    sq = jnp.dot(x2, red_ref[...],
                 preferred_element_type=jnp.float32,
                 precision=jax.lax.Precision.HIGHEST)        # (tr, p*7)

    inv_norm = jax.lax.rsqrt(sq)                             # 1/||x||   (EUP)
    norm = sq * inv_norm                                     # ||x||     (VPU)
    z = norm + b_ref[...]                                    # + bias (broadcast row)
    sig = 0.5 * (jnp.tanh(0.5 * z) + 1.0)                    # sigmoid   (EUP: tanh)
    scal = z * sig * inv_norm                                # SiLU(z) / ||x||

    # Expand per-instance scale back to per-component lanes (MXU again).
    scale = jnp.dot(scal, exp_ref[...],
                    preferred_element_type=jnp.float32,
                    precision=jax.lax.Precision.HIGHEST)     # (tr, p*15)

    o_ref[...] = (x * scale).astype(o_ref.dtype)             # single dense store


def nonlinear2d(feat, biases, *, target_rows=2048):
    """feat: (data_num, Lx, Ly, FEATURE_DIM) channels-last; biases: (NUM_IRREPS,)."""
    N, Lx, Ly, F = feat.shape
    assert F == FEATURE_DIM
    M = N * Lx * Ly

    # Pack p sites per lane-row (p*15 <= 128).  Pure view of the contiguous
    # buffer -> no HBM layout pass.  Falls back to smaller p if M is odd-sized.
    p = 8
    while M % p:
        p //= 2
    G = p * FEATURE_DIM
    rows = M // p
    x2d = feat.reshape(rows, G)

    # Row tile: big blocks (~1 MB), partial last block instead of padding.
    tr = max(8, (int(target_rows) // 8) * 8)
    if rows <= tr:
        tr = rows                     # single full block (no divisibility constraint)
    grid = pl.cdiv(rows, tr)

    red, exp = _packed_matrices(p)
    b_row = jnp.tile(biases.astype(jnp.float32), p).reshape(1, p * NUM_IRREPS)

    out = pl.pallas_call(
        _norm_act_kernel,
        out_shape=jax.ShapeDtypeStruct((rows, G), feat.dtype),
        grid_spec=pltpu.PrefetchScalarGridSpec(
            num_scalar_prefetch=0,
            grid=(grid,),
            in_specs=[
                pl.BlockSpec((1, p * NUM_IRREPS), lambda i: (0, 0)),       # biases
                pl.BlockSpec((G, p * NUM_IRREPS), lambda i: (0, 0)),       # reduce mat
                pl.BlockSpec((p * NUM_IRREPS, G), lambda i: (0, 0)),       # expand mat
                pl.BlockSpec((tr, G), lambda i: (i, 0)),                   # data
            ],
            out_specs=pl.BlockSpec((tr, G), lambda i: (i, 0)),
        ),
        compiler_params=pltpu.CompilerParams(
            dimension_semantics=("parallel",),
            vmem_limit_bytes=32 * 1024 * 1024),
    )(b_row, red, exp, x2d)

    return out.reshape(N, Lx, Ly, F)


def nonlinear2d_ref(feat, biases):
    """Pure-JAX reference of the same NormActivation semantics."""
    N, Lx, Ly, F = feat.shape
    x = feat.reshape(-1, F).astype(jnp.float32)
    outs = []
    col = 0
    inst = 0
    for mul, l in IRREPS:
        d = 2 * l + 1
        for _u in range(mul):
            blk = x[:, col:col + d]
            n = jnp.sqrt(jnp.sum(blk * blk, axis=1, keepdims=True))
            z = n + biases[inst]
            s = (z / (1.0 + jnp.exp(-z))) / n
            outs.append(blk * s)
            col += d
            inst += 1
    return jnp.concatenate(outs, axis=1).reshape(N, Lx, Ly, F).astype(feat.dtype)


if __name__ == "__main__":
    key = jax.random.PRNGKey(0)
    k_feat, k_bias = jax.random.split(key)

    # Small shapes consistent with the module's forward: (data_num, Lx, Ly, feature_dim)
    feat = jax.random.normal(k_feat, (2, 16, 16, FEATURE_DIM), dtype=jnp.float32)
    # NormActivation biases (one per irrep instance); e3nn inits zeros — use small
    # deterministic nonzero values so the bias path is exercised.
    biases = 0.1 * jax.random.normal(k_bias, (NUM_IRREPS,), dtype=jnp.float32)

    out = nonlinear2d(feat, biases)
    out = jax.block_until_ready(out)

    ref = nonlinear2d_ref(feat, biases)
    assert out.shape == feat.shape and out.dtype == feat.dtype
    assert jnp.allclose(out, ref, rtol=1e-5, atol=1e-5), "kernel does not match reference"

    print("KERNEL_OK")
</pallas_src>

<mosaic_0001>
module attributes {stable_mosaic.version = 11 : i64} {
  func.func @_norm_act_kernel(%arg0: i32, %arg1: memref<1x56xf32, #tpu.memory_space<vmem>>, %arg2: memref<120x56xf32, #tpu.memory_space<vmem>>, %arg3: memref<56x120xf32, #tpu.memory_space<vmem>>, %arg4: memref<64x120xf32, #tpu.memory_space<vmem>>, %arg5: memref<64x120xf32, #tpu.memory_space<vmem>>) attributes {dimension_semantics = [#tpu.dimension_semantics<parallel>], iteration_bounds = array<i64: 1>, scalar_prefetch = 0 : i64, scratch_operands = 0 : i64, tpu.core_type = #tpu.core_type<tc>, window_params = [{pipeline_mode = #tpu.pipeline_mode<synchronous>, transform_indices = @transform_0, window_bounds = array<i64: 1, 56>}, {pipeline_mode = #tpu.pipeline_mode<synchronous>, transform_indices = @transform_1, window_bounds = array<i64: 120, 56>}, {pipeline_mode = #tpu.pipeline_mode<synchronous>, transform_indices = @transform_2, window_bounds = array<i64: 56, 120>}, {transform_indices = @transform_3, window_bounds = array<i64: 64, 120>}, {transform_indices = @transform_4, window_bounds = array<i64: 64, 120>}]} {
    %c0 = arith.constant 0 : index
    %c0_0 = arith.constant 0 : index
    %0 = vector.load %arg4[%c0, %c0_0] : memref<64x120xf32, #tpu.memory_space<vmem>>, vector<64x120xf32>
    %1 = arith.mulf %0, %0 : vector<64x120xf32>
    %c0_1 = arith.constant 0 : index
    %c0_2 = arith.constant 0 : index
    %2 = vector.load %arg2[%c0_1, %c0_2] : memref<120x56xf32, #tpu.memory_space<vmem>>, vector<120x56xf32>
    %cst = arith.constant dense<0.000000e+00> : vector<64x56xf32>
    %3 = tpu.matmul %1, %2, %cst {dimension_numbers = #tpu.dot_dimension_numbers<[1], [0], [0], [1], [0, 0, 1, 1], [], []>, precision = #tpu.contract_precision<fp32>} : vector<64x120xf32>, vector<120x56xf32>, vector<64x56xf32> -> vector<64x56xf32>
    %4 = math.rsqrt %3 : vector<64x56xf32>
    %5 = arith.mulf %3, %4 : vector<64x56xf32>
    %c0_3 = arith.constant 0 : index
    %c0_4 = arith.constant 0 : index
    %6 = vector.load %arg1[%c0_3, %c0_4] : memref<1x56xf32, #tpu.memory_space<vmem>>, vector<1x56xf32>
    %7 = vector.broadcast %6 : vector<1x56xf32> to vector<64x56xf32>
    %8 = arith.addf %5, %7 : vector<64x56xf32>
    %cst_5 = arith.constant 5.000000e-01 : f32
    %9 = vector.broadcast %cst_5 : f32 to vector<64x56xf32>
    %10 = arith.mulf %9, %8 : vector<64x56xf32>
    %11 = math.tanh %10 : vector<64x56xf32>
    %cst_6 = arith.constant 1.000000e+00 : f32
    %12 = vector.broadcast %cst_6 : f32 to vector<64x56xf32>
    %13 = arith.addf %11, %12 : vector<64x56xf32>
    %cst_7 = arith.constant 5.000000e-01 : f32
    %14 = vector.broadcast %cst_7 : f32 to vector<64x56xf32>
    %15 = arith.mulf %14, %13 : vector<64x56xf32>
    %16 = arith.mulf %8, %15 : vector<64x56xf32>
    %17 = arith.mulf %16, %4 : vector<64x56xf32>
    %c0_8 = arith.constant 0 : index
    %c0_9 = arith.constant 0 : index
    %18 = vector.load %arg3[%c0_8, %c0_9] : memref<56x120xf32, #tpu.memory_space<vmem>>, vector<56x120xf32>
    %cst_10 = arith.constant dense<0.000000e+00> : vector<64x120xf32>
    %19 = tpu.matmul %17, %18, %cst_10 {dimension_numbers = #tpu.dot_dimension_numbers<[1], [0], [0], [1], [0, 0, 1, 1], [], []>, precision = #tpu.contract_precision<fp32>} : vector<64x56xf32>, vector<56x120xf32>, vector<64x120xf32> -> vector<64x120xf32>
    %20 = arith.mulf %0, %19 : vector<64x120xf32>
    %c0_11 = arith.constant 0 : index
    %c0_12 = arith.constant 0 : index
    %21 = vector.load %arg5[%c0_11, %c0_12] : memref<64x120xf32, #tpu.memory_space<vmem>>, vector<64x120xf32>
    tpu.vector_store %arg5[%c0_11, %c0_12], %20 {strides = array<i32>} : memref<64x120xf32, #tpu.memory_space<vmem>>, vector<64x120xf32>,
    return
  }
  func.func @transform_0(%arg0: i32) -> (i32, i32) {
    %c0_i32 = arith.constant 0 : i32
    %c0_i32_0 = arith.constant 0 : i32
    %c0_i32_1 = arith.constant 0 : i32
    return %c0_i32, %c0_i32_0 : i32, i32
  }
  func.func @transform_1(%arg0: i32) -> (i32, i32) {
    %c0_i32 = arith.constant 0 : i32
    %c0_i32_0 = arith.constant 0 : i32
    %c0_i32_1 = arith.constant 0 : i32
    return %c0_i32, %c0_i32_0 : i32, i32
  }
  func.func @transform_2(%arg0: i32) -> (i32, i32) {
    %c0_i32 = arith.constant 0 : i32
    %c0_i32_0 = arith.constant 0 : i32
    %c0_i32_1 = arith.constant 0 : i32
    return %c0_i32, %c0_i32_0 : i32, i32
  }
  func.func @transform_3(%arg0: i32) -> (i32, i32) {
    %c0_i32 = arith.constant 0 : i32
    %c0_i32_0 = arith.constant 0 : i32
    return %arg0, %c0_i32 : i32, i32
  }
  func.func @transform_4(%arg0: i32) -> (i32, i32) {
    %c0_i32 = arith.constant 0 : i32
    %c0_i32_0 = arith.constant 0 : i32
    return %arg0, %c0_i32 : i32, i32
  }
}

</mosaic_0001>

<bundles_post_ra>
// kernel: tpu_custom_call.1
= control target key start
LH: loop header
LB: loop body
LE: loop exit
PB: predicated region body
PF: predicated region fallthrough
CT: control target
= control target key end

     0   :  { %s3778_s0 = inlined_call_operand.vmem [shape: f32[1,56], index: 0, kind: input, shape index: {}]   ;;  %s3779_s1 = inlined_call_operand.vmem [shape: f32[120,56], index: 1, kind: input, shape index: {}]   ;;  %s3780_s2 = inlined_call_operand.vmem [shape: f32[56,120], index: 2, kind: input, shape index: {}]   ;;  %s3781_s3 = inlined_call_operand.vmem [shape: f32[64,120], index: 3, kind: input, shape index: {}]   ;;  %s3782_s4 = inlined_call_operand.hbm [shape: f32[64,120], index: 4, kind: output, shape index: {}]  }
   0x1   :  { %v34_v0 = vld [vmem:[%s3779_s1] sm:$0xff]  ;;  %v35_v1 = vld [vmem:[%s3779_s1 + $0x8] sm:$0xff]  ;;  %v36_v2 = vld [vmem:[%s3779_s1 + $0x10] sm:$0xff] }
   0x2   :  { %v75_v3 = vand.u32 4294901760, %v34_v0  ;;  %v78_v4 = vand.u32 4294901760, %v35_v1  ;;  %v37_v5 = vld [vmem:[%s3779_s1 + $0x18] sm:$0xff]  ;;  %v81_v6 = vand.u32 4294901760, %v36_v2  ;;  %v38_v7 = vld [vmem:[%s3779_s1 + $0x20] sm:$0xff]  ;;  %v39_v8 = vld [vmem:[%s3779_s1 + $0x28] sm:$0xff] }
   0x3   :  { %v84_v9 = vand.u32 4294901760, %v37_v5  ;;  %v87_v10 = vand.u32 4294901760, %v38_v7  ;;  %v90_v11 = vand.u32 4294901760, %v39_v8  ;;  %v40_v16 = vld [vmem:[%s3779_s1 + $0x30] sm:$0xff]  ;;  %v41_v17 = vld [vmem:[%s3779_s1 + $0x38] sm:$0xff]  ;;  %v42_v37 = vld [vmem:[%s3779_s1 + $0x40] sm:$0xff] }
   0x4   :  { %v3041_v12 = vpack.c.bf16 %v78_v4, %v75_v3  ;;  %v3043_v13 = vsub.f32 %v34_v0, %v75_v3  ;;  %v3045_v14 = vsub.f32 %v35_v1, %v78_v4  ;;  %v3047_v15 = vsub.f32 %v36_v2, %v81_v6  ;;  %v43_v38 = vld [vmem:[%s3779_s1 + $0x48] sm:$0xff] }
   0x5   :  { %v3055_v18 = vpack.c.bf16 %v84_v9, %v81_v6  ;;  %v3057_v19 = vsub.f32 %v37_v5, %v84_v9  ;;  %v3059_v20 = vsub.f32 %v38_v7, %v87_v10  ;;  %v3064_v24 = vsub.f32 %v39_v8, %v90_v11 }
   0x6   :  { %v237_v21 = vand.u32 4294901760, %v3043_v13  ;;  %v244_v22 = vand.u32 4294901760, %v3045_v14  ;;  %v251_v23 = vand.u32 4294901760, %v3047_v15  ;;  %2609 = vmatprep.subr.bf16.mxu1 %v3041_v12  ;;  %v93_v27 = vand.u32 4294901760, %v40_v16 }
   0x7   :  { %v258_v25 = vand.u32 4294901760, %v3057_v19  ;;  %v265_v26 = vand.u32 4294901760, %v3059_v20  ;;  %v96_v28 = vand.u32 4294901760, %v41_v17  ;;  %2611 = vmatpush3.bf16.msra.mxu1 %v3041_v12  ;;  %v272_v32 = vand.u32 4294901760, %v3064_v24 }
   0x8   :  { %v238_v29 = vsub.f32 %v3043_v13, %v237_v21  ;;  %v245_v30 = vsub.f32 %v3045_v14, %v244_v22  ;;  %v252_v31 = vsub.f32 %v3047_v15, %v251_v23  ;;  %2613 = vmatprep.subr.bf16.mxu1 %v3055_v18  ;;  %v3084_v34 = vpack.c.bf16 %v90_v11, %v87_v10 }
   0x9   :  { %v259_v33 = vsub.f32 %v3057_v19, %v258_v25  ;;  %v266_v35 = vsub.f32 %v3059_v20, %v265_v26  ;;  %v3089_v36 = vsub.f32 %v40_v16, %v93_v27 }
   0xa   :  { %9 = vsyncpa [#allocation3], 0  ;;  %v239_v39 = vand.u32 4294901760, %v238_v29  ;;  %v246_v40 = vand.u32 4294901760, %v245_v30  ;;  %v253_v41 = vand.u32 4294901760, %v252_v31  ;;  %v273_v42 = vsub.f32 %v3064_v24, %v272_v32  ;;  %v44_v43 = vld [vmem:[%s3779_s1 + $0x50] sm:$0xff] }
   0xb   :  { %v260_v44 = vand.u32 4294901760, %v259_v33  ;;  %v267_v45 = vand.u32 4294901760, %v266_v35  ;;  %v279_v46 = vand.u32 4294901760, %v3089_v36  ;;  %v3104_v47 = vsub.f32 %v41_v17, %v96_v28  ;;  %2615 = vmatpush3.bf16.msra.mxu1 %v3055_v18  ;;  %v45_v52 = vld [vmem:[%s3779_s1 + $0x58] sm:$0xff]  ;;  %v3118_v57 = vld [vmem:[%s3779_s1 + $0x60] sm:$0xff]  ;;  %v3123_v58 = vld [vmem:[%s3779_s1 + $0x68] sm:$0xff] }
   0xc   :  { %v2636_v48 = vpack.c.bf16 %v246_v40, %v239_v39  ;;  %v274_v49 = vand.u32 4294901760, %v273_v42  ;;  %v99_v50 = vand.u32 4294901760, %v42_v37  ;;  %v102_v51 = vand.u32 4294901760, %v43_v38  ;;  %2617 = vmatprep.subr.bf16.mxu1 %v3084_v34  ;;  %v48_v10 = vld [vmem:[%s3779_s1 + $0x70] sm:$0xff]  ;;  %v19_v40 = vld [vmem:[%s3781_s3 + $0x8] sm:$0xff]  ;;  %s2995_s7 = smov [#allocation2]  }
   0xd   :  { %v2640_v53 = vpack.c.bf16 %v260_v44, %v253_v41  ;;  %v280_v54 = vsub.f32 %v3089_v36, %v279_v46  ;;  %v286_v55 = vand.u32 4294901760, %v3104_v47  ;;  %v105_v56 = vand.u32 4294901760, %v44_v43  ;;  %s1960_s8 = sshll.u32 %s2995_s7, 4  ;;  %s1961_s8 = int_to_ptr.vmem [resolvable:$true] %s1960_s8 }
   0xe   :  { %2637 = vmatprep.subr.bf16.mxu0 %v2636_v48  ;;  %v2644_v59 = vpack.c.bf16 %v274_v49, %v267_v45  ;;  %v3125_v60 = vpack.c.bf16 %v96_v28, %v93_v27  ;;  %v3127_v61 = vsub.f32 %v42_v37, %v99_v50  ;;  %v3129_v62 = vsub.f32 %v43_v38, %v102_v51  ;;  %v18_v28 = vld [vmem:[%s3781_s3] sm:$0xff]  ;;  %s2971_s13 = scalar_lea.vmem %s1961_s8, 1024  ;;  %p2976_p1 = scmp.lt.s32.totalorder %s1961_s8, %s1961_s8 }
   0xf   :  { %2639 = vmatpush3.bf16.msra.mxu0 %v2636_v48  ;;  %v281_v63 = vand.u32 4294901760, %v280_v54  ;;  %v287_v0 = vsub.f32 %v3104_v47, %v286_v55  ;;  %v108_v1 = vand.u32 4294901760, %v45_v52  ;;  %v3134_v2 = vsub.f32 %v44_v43, %v105_v56  ;;  %2619 = vmatpush3.bf16.msra.mxu1 %v3084_v34  ;;  %p2972_p0 = scmp.ne.s32.totalorder %s1961_s8, %s2971_s13  ;;  %p2977_p2 = scmp.lt.s32.totalorder %s2971_s13, %s2971_s13 }
  0x10   :  { %2641 = vmatprep.subr.bf16.mxu0 %v2640_v53  ;;  %v293_v3 = vand.u32 4294901760, %v3127_v61  ;;  %v300_v4 = vand.u32 4294901760, %v3129_v62  ;;  %v111_v5 = vand.u32 4294901760, %v3118_v57  ;;  %v114_v6 = vand.u32 4294901760, %v3123_v58  ;;  %2621 = vmatprep.subr.bf16.mxu1 %v3125_v60 }
  0x11   :  { %v288_v7 = vand.u32 4294901760, %v287_v0  ;;  %v307_v8 = vand.u32 4294901760, %v3134_v2  ;;  %v3143_v9 = vsub.f32 %v45_v52, %v108_v1  ;;  %vm49_vm0 = vcmask 982016   ;;  %v23_v0 = vld [vmem:[%s3781_s3 + $0x28] sm:$0xff]  ;;  %p2978_p3 = por %p2977_p2, %p2976_p1 }
  0x12   :  { %v3148_v11 = vpack.c.bf16 %v102_v51, %v99_v50  ;;  %v294_v16 = vsub.f32 %v3127_v61, %v293_v3  ;;  %v301_v17 = vsub.f32 %v3129_v62, %v300_v4  ;;  %v3157_v27 = vsub.f32 %v3118_v57, %v111_v5 }
  0x13   :  { %2643 = vmatpush3.bf16.msra.mxu0 %v2640_v53  ;;  %v2648_v29 = vpack.c.bf16 %v288_v7, %v281_v63  ;;  %v308_v30 = vsub.f32 %v3134_v2, %v307_v8  ;;  %v314_v31 = vand.u32 4294901760, %v3143_v9  ;;  %v3167_v33 = vsub.f32 %v3123_v58, %v114_v6  ;;  %2623 = vmatpush3.bf16.msra.mxu1 %v3125_v60  ;;  %v20_v58 = vld [vmem:[%s3781_s3 + $0x10] sm:$0xff]  ;;  %v22_v63 = vld [vmem:[%s3781_s3 + $0x20] sm:$0xff]  ;;  %p2979_p4 = pnand %p2978_p3, %p2972_p0 }
  0x14   :  { %2645 = vmatprep.subr.bf16.mxu0 %v2644_v59  ;;  %v295_v35 = vand.u32 4294901760, %v294_v16  ;;  %v302_v37 = vand.u32 4294901760, %v301_v17  ;;  %v321_v38 = vand.u32 4294901760, %v3157_v27  ;;  %v3171_v39 = vand.u32 4294901760, %v48_v10  ;;  %2625 = vmatprep.subr.bf16.mxu1 %v3148_v11  ;;  %v24_v16 = vld [vmem:[%s3781_s3 + $0x30] sm:$0xff] }
  0x15   :  { %v315_v41 = vsub.f32 %v3143_v9, %v314_v31  ;;  %v328_v42 = vand.u32 4294901760, %v3167_v33  ;;  %v26_v43 = vmul.f32 %v18_v28, %v18_v28  ;;  %v3181_v44 = vpack.c.bf16 %v108_v1, %v105_v56 }
  0x16   :  { %v322_v45 = vsub.f32 %v3157_v27, %v321_v38  ;;  %v3187_v48 = vsub.f32 %v48_v10, %v3171_v39  ;;  %v309_v49 = vand.u32 4294901760, %v308_v30  ;;  %v27_v52 = vmul.f32 %v19_v40, %v19_v40 }
  0x17   :  { %2647 = vmatpush3.bf16.msra.mxu0 %v2644_v59  ;;  %v329_v50 = vsub.f32 %v3167_v33, %v328_v42  ;;  %v51_v51 = vsel %vm49_vm0, %v26_v43, 0  ;;  %2627 = vmatpush3.bf16.msra.mxu1 %v3148_v11  ;;  %v2652_v53 = vpack.c.bf16 %v302_v37, %v295_v35  ;;  %v316_v54 = vand.u32 4294901760, %v315_v41  ;;  %v21_v59 = vld [vmem:[%s3781_s3 + $0x18] sm:$0xff] }
  0x18   :  { %2649 = vmatprep.subr.bf16.mxu0 %v2648_v29  ;;  %v3195_v56 = vand.u32 4294901760, %v3187_v48  ;;  %v3197_v57 = vand.u32 4294901760, %v51_v51  ;;  %2629 = vmatprep.subr.bf16.mxu1 %v3181_v44  ;;  %v3212_v1 = vpack.c.bf16 %v114_v6, %v111_v5  ;;  %v323_v7 = vand.u32 4294901760, %v322_v45 }
  0x19   :  { %v330_v10 = vand.u32 4294901760, %v329_v50  ;;  %v54_v28 = vsel %vm49_vm0, %v27_v52, 0  ;;  %v28_v30 = vmul.f32 %v20_v58, %v20_v58  ;;  %v29_v35 = vmul.f32 %v21_v59, %v21_v59 }
  0x1a   :  { %2272 = vmatprep.mubr.f32.mxu0 %v3197_v57  ;;  %v336_v17 = vsub.f32 %v3187_v48, %v3195_v56  ;;  %v2656_v37 = vpack.c.bf16 %v316_v54, %v309_v49  ;;  %v30_v5 = vmul.f32 %v22_v63, %v22_v63  ;;  %v31_v6 = vmul.f32 %v23_v0, %v23_v0  ;;  %v25_v49 = vld [vmem:[%s3781_s3 + $0x38] sm:$0xff] }
  0x1b   :  { %2651 = vmatpush3.bf16.msra.mxu0 %v2648_v29  ;;  %2631 = vmatpush3.bf16.msra.mxu1 %v3181_v44  ;;  %v57_v40 = vsel %vm49_vm0, %v28_v30, 0  ;;  %v60_v41 = vsel %vm49_vm0, %v29_v35, 0  ;;  %v32_v43 = vmul.f32 %v24_v16, %v24_v16  ;;  %v3225_v29 = vand.u32 4294901760, %v54_v28 }
  0x1c   :  { %2653 = vmatprep.subr.bf16.mxu0 %v2652_v53  ;;  %2633 = vmatprep.subr.bf16.mxu1 %v3212_v1  ;;  %v63_v45 = vsel %vm49_vm0, %v30_v5, 0  ;;  %v66_v50 = vsel %vm49_vm0, %v31_v6, 0  ;;  %v2660_v52 = vpack.c.bf16 %v330_v10, %v323_v7  ;;  %v337_v54 = vand.u32 4294901760, %v336_v17 }
  0x1d   :  { %v3233_v58 = vsub.f32 %v54_v28, %v3225_v29  ;;  %v3235_v59 = vand.u32 4294901760, %v57_v40  ;;  %v3237_v63 = vand.u32 4294901760, %v60_v41  ;;  %v3239_v0 = vand.u32 4294901760, %v63_v45 }
  0x1e   :  { %v3242_v16 = vand.u32 4294901760, %v66_v50  ;;  %v69_v30 = vsel %vm49_vm0, %v32_v43, 0  ;;  %v33_v35 = vmul.f32 %v25_v49, %v25_v49  ;;  %v3253_v7 = vsub.f32 %v51_v51, %v3197_v57 }
  0x1f   :  { %2655 = vmatpush3.bf16.msra.mxu0 %v2652_v53  ;;  %2635 = vmatpush3.bf16.msra.mxu1 %v3212_v1  ;;  %v3249_v53 = vpack.c.bf16 %v244_v22, %v237_v21  ;;  %v3256_v10 = vsub.f32 %v57_v40, %v3235_v59  ;;  %v3259_v17 = vsub.f32 %v60_v41, %v3237_v63  ;;  %vm1089_vm1 = vcmask 457728  }
  0x20   :  { %2657 = vmatprep.subr.bf16.mxu0 %v2656_v37  ;;  %2228 = vmatprep.subr.mxu1 %v3171_v39  ;;  %v3262_v28 = vsub.f32 %v63_v45, %v3239_v0  ;;  %v3268_v21 = vpack.c.bf16 %v258_v25, %v251_v23  ;;  %v3274_v22 = vpack.c.bf16 %v272_v32, %v265_v26  ;;  %v156_v23 = vand.u32 4294901760, %v3253_v7 }
  0x21   :  { %v3280_v51 = vpack.c.bf16 %v286_v55, %v279_v46  ;;  %v166_v25 = vand.u32 4294901760, %v3233_v58  ;;  %v176_v26 = vand.u32 4294901760, %v3256_v10  ;;  %v3295_v32 = vpack.c.bf16 %v314_v31, %v307_v8 }
  0x22   :  { %v3298_v46 = vand.u32 4294901760, %v69_v30  ;;  %v72_v55 = vsel %vm49_vm0, %v33_v35, 0  ;;  %v3783_v5 = vand.u32 4294901760, %v3262_v28  ;;  %v157_v8 = vsub.f32 %v3253_v7, %v156_v23 }
  0x23   :  { %2659 = vmatpush3.bf16.msra.mxu0 %v2656_v37  ;;  %v3286_v37 = vpack.c.bf16 %v300_v4, %v293_v3  ;;  %2229 = vmatpush3.msra.mxu1 %v3171_v39  ;;  %v186_v3 = vand.u32 4294901760, %v3259_v17  ;;  %v3306_v4 = vpack.c.bf16 %v328_v42, %v321_v38  ;;  %v167_v31 = vsub.f32 %v3233_v58, %v166_v25 }
  0x24   :  { %2661 = vmatprep.subr.bf16.mxu0 %v2660_v52  ;;  %v177_v6 = vsub.f32 %v3256_v10, %v176_v26  ;;  %v2664_v40 = vpack.c.bf16 %v3045_v14, %v3043_v13  ;;  %v3321_v38 = vsub.f32 %v66_v50, %v3242_v16  ;;  %v3327_v41 = vsub.f32 %v69_v30, %v3298_v46 }
  0x25   :  { %v187_v42 = vsub.f32 %v3259_v17, %v186_v3  ;;  %v158_v43 = vand.u32 4294901760, %v157_v8  ;;  %v168_v45 = vand.u32 4294901760, %v167_v31  ;;  %v197_v49 = vsub.f32 %v3262_v28, %v3783_v5 }
  0x26   :  { %v206_v13 = vand.u32 4294901760, %v3321_v38  ;;  %v2668_v14 = vpack.c.bf16 %v3057_v19, %v3047_v15  ;;  %v216_v50 = vand.u32 4294901760, %v3327_v41  ;;  %v178_v35 = vand.u32 4294901760, %v177_v6 }
  0x27   :  { %2663 = vmatpush3.bf16.msra.mxu0 %v2660_v52  ;;  %v3332_v52 = vand.u32 4294901760, %v72_v55  ;;  %2230 = vmatprep.mubr.f32.mxu1 %v158_v43  ;;  %v188_v8 = vand.u32 4294901760, %v187_v42  ;;  %v198_v5 = vand.u32 4294901760, %v197_v49 }
  0x28   :  { %2270 = vmatprep.subr.mxu0 %v337_v54  ;;  %2231 = vmatmul.mubr.f32.vlgmr.msra.gmra.mrb[0].mxu1 %v168_v45  ;;  %v207_v31 = vsub.f32 %v3321_v38, %v206_v13  ;;  %v217_v15 = vsub.f32 %v3327_v41, %v216_v50 }
  0x29   :  { %v3339_v30 = vsub.f32 %v72_v55, %v3332_v52  ;;  %2233 = vmatprep.mubr.f32.mxu1 %v178_v35 }
  0x2a   :  { %v208_v55 = vand.u32 4294901760, %v207_v31  ;;  %v218_v42 = vand.u32 4294901760, %v217_v15 }
  0x2b   :  { %2271 = vmatpush3.msra.mxu0 %v337_v54  ;;  %v226_v19 = vand.u32 4294901760, %v3339_v30  ;;  %v2672_v54 = vpack.c.bf16 %v3064_v24, %v3059_v20  ;;  %v2680_v24 = vpack.c.bf16 %v3129_v62, %v3127_v61  ;;  %v3784_v61 = vand.u32 4294901760, %v3262_v28 }
  0x2c   :  { %2665 = vmatprep.subr.bf16.mxu0 %v2664_v40  ;;  %2273 = vmatmul.mubr.f32.vlgmr.msra.gmra.mrb[0].mxu0 %v3225_v29 }
  0x2d   :  { %2667 = vmatpush3.bf16.msra.mxu0 %v2664_v40  ;;  %2275 = vmatprep.mubr.f32.mxu0 %v3235_v59  ;;  %v227_v6 = vsub.f32 %v3339_v30, %v226_v19  ;;  %v2676_v40 = vpack.c.bf16 %v3104_v47, %v3089_v36  ;;  %v2684_v36 = vpack.c.bf16 %v3143_v9, %v3134_v2 }
  0x2e   :  { %2669 = vmatprep.subr.bf16.mxu0 %v2668_v14  ;;  %2234 = vmatmul.mubr.f32.gmra.mrb[2].mxu1 %v188_v8  ;;  %v2688_v47 = vpack.c.bf16 %v3167_v33, %v3157_v27  ;;  %v1082_v27 = vld [vmem:[%s3780_s2] sm:$0xff]  ;;  %v1083_v33 = vld [vmem:[%s3780_s2 + $0x8] sm:$0xff] }
  0x2f   :  { %2236 = vmatprep.mubr.f32.mxu1 %v198_v5  ;;  %v228_v20 = vand.u32 4294901760, %v227_v6 }
  0x30   :  { %2276 = vmatmul.mubr.f32.gmra.mrb[2].mxu0 %v3237_v63 }
  0x31   :  { %2671 = vmatpush3.bf16.msra.mxu0 %v2668_v14  ;;  %2278 = vmatprep.mubr.f32.mxu0 %v3239_v0 }
  0x32   :  { %2673 = vmatprep.subr.bf16.mxu0 %v2672_v54  ;;  %2237 = vmatmul.mubr.f32.gmra.mrb[4].mxu1 %v208_v55 }
  0x33   :  { %2239 = vmatprep.mubr.f32.mxu1 %v218_v42 }
  0x34   :  { %2279 = vmatmul.mubr.f32.gmra.mrb[4].mxu0 %v3242_v16 }
  0x35   :  { %2675 = vmatpush3.bf16.msra.mxu0 %v2672_v54  ;;  %2281 = vmatprep.mubr.f32.mxu0 %v3298_v46 }
  0x36   :  { %2677 = vmatprep.subr.bf16.mxu0 %v2676_v40  ;;  %2240 = vmatmul.mubr.f32.gmra.mrb[6].mxu1 %v228_v20 }
  0x38   :  { %2282 = vmatmul.mubr.f32.gmra.mrb[6].mxu0 %v3332_v52 }
  0x39   :  { %2679 = vmatpush3.bf16.msra.mxu0 %v2676_v40  ;;  %2314 = vmatprep.mubr.f32.mxu0 %v3253_v7 }
  0x3a   :  { %2681 = vmatprep.subr.bf16.mxu0 %v2680_v24 }
  0x3d   :  { %2683 = vmatpush3.bf16.msra.mxu0 %v2680_v24 }
  0x3e   :  { %2685 = vmatprep.subr.bf16.mxu0 %v2684_v36 }
  0x41   :  { %2687 = vmatpush3.bf16.msra.mxu0 %v2684_v36 }
  0x42   :  { %2689 = vmatprep.subr.bf16.mxu0 %v2688_v47 }
  0x45   :  { %2691 = vmatpush3.bf16.msra.mxu0 %v2688_v47 }
  0x46   :  { %2312 = vmatprep.subr.mxu0 %v3187_v48 }
  0x49   :  { %2313 = vmatpush3.msra.mxu0 %v3187_v48 }
  0x4a   :  { %2693 = vmatprep.subr.bf16.mxu0 %v3041_v12  ;;  %2315 = vmatmul.mubr.f32.vlgmr.msra.gmra.mrb[0].mxu0 %v3233_v58 }
  0x4b   :  { %2695 = vmatpush3.bf16.msra.mxu0 %v3041_v12  ;;  %2317 = vmatprep.mubr.f32.mxu0 %v3256_v10 }
  0x4c   :  { %2697 = vmatprep.subr.bf16.mxu0 %v3055_v18 }
  0x4e   :  { %2318 = vmatmul.mubr.f32.gmra.mrb[2].mxu0 %v3259_v17 }
  0x4f   :  { %2699 = vmatpush3.bf16.msra.mxu0 %v3055_v18  ;;  %2320 = vmatprep.mubr.f32.mxu0 %v3262_v28 }
  0x50   :  { %2701 = vmatprep.subr.bf16.mxu0 %v3084_v34 }
  0x52   :  { %2321 = vmatmul.mubr.f32.gmra.mrb[4].mxu0 %v3321_v38 }
  0x53   :  { %2703 = vmatpush3.bf16.msra.mxu0 %v3084_v34  ;;  %2323 = vmatprep.mubr.f32.mxu0 %v3327_v41 }
  0x54   :  { %2705 = vmatprep.subr.bf16.mxu0 %v3125_v60 }
  0x56   :  { %2324 = vmatmul.mubr.f32.gmra.mrb[6].mxu0 %v3339_v30 }
  0x57   :  { %2707 = vmatpush3.bf16.msra.mxu0 %v3125_v60  ;;  %2356 = vmatprep.mubr.f32.mxu0 %v156_v23 }
  0x58   :  { %2709 = vmatprep.subr.bf16.mxu0 %v3148_v11 }
  0x5b   :  { %2711 = vmatpush3.bf16.msra.mxu0 %v3148_v11 }
  0x5c   :  { %2713 = vmatprep.subr.bf16.mxu0 %v3181_v44 }
  0x5f   :  { %2715 = vmatpush3.bf16.msra.mxu0 %v3181_v44 }
  0x60   :  { %2717 = vmatprep.subr.bf16.mxu0 %v3212_v1 }
  0x63   :  { %2719 = vmatpush3.bf16.msra.mxu0 %v3212_v1 }
  0x64   :  { %2354 = vmatprep.subr.mxu0 %v3171_v39 }
  0x67   :  { %2355 = vmatpush3.msra.mxu0 %v3171_v39 }
  0x68   :  { %2721 = vmatprep.subr.bf16.mxu0 %v3249_v53  ;;  %2357 = vmatmul.mubr.f32.vlgmr.msra.gmra.mrb[0].mxu0 %v166_v25 }
  0x69   :  { %2723 = vmatpush3.bf16.msra.mxu0 %v3249_v53  ;;  %2359 = vmatprep.mubr.f32.mxu0 %v176_v26 }
  0x6a   :  { %2725 = vmatprep.subr.bf16.mxu0 %v3268_v21 }
  0x6c   :  { %2360 = vmatmul.mubr.f32.gmra.mrb[2].mxu0 %v186_v3 }
  0x6d   :  { %2727 = vmatpush3.bf16.msra.mxu0 %v3268_v21  ;;  %2362 = vmatprep.mubr.f32.mxu0 %v3784_v61  ;;  %v3507_v21 = vld [vmem:[%s3780_s2 + $0x30] sm:$0xff] }
  0x6e   :  { %2729 = vmatprep.subr.bf16.mxu0 %v3274_v22 }
  0x70   :  { %2363 = vmatmul.mubr.f32.gmra.mrb[4].mxu0 %v206_v13 }
  0x71   :  { %2731 = vmatpush3.bf16.msra.mxu0 %v3274_v22  ;;  %2365 = vmatprep.mubr.f32.mxu0 %v216_v50  ;;  %v3510_v22 = vand.u32 4294901760, %v3507_v21 }
  0x72   :  { %2733 = vmatprep.subr.bf16.mxu0 %v3280_v51 }
  0x74   :  { %2366 = vmatmul.mubr.f32.gmra.mrb[6].mxu0 %v226_v19 }
  0x75   :  { %2735 = vmatpush3.bf16.msra.mxu0 %v3280_v51  ;;  %2398 = vmatprep.mubr.f32.mxu0 %v3197_v57 }
  0x76   :  { %2737 = vmatprep.subr.bf16.mxu0 %v3286_v37 }
  0x79   :  { %2739 = vmatpush3.bf16.msra.mxu0 %v3286_v37 }
  0x7a   :  { %2741 = vmatprep.subr.bf16.mxu0 %v3295_v32 }
  0x7d   :  { %2743 = vmatpush3.bf16.msra.mxu0 %v3295_v32 }
  0x7e   :  { %2745 = vmatprep.subr.bf16.mxu0 %v3306_v4 }
  0x81   :  { %2747 = vmatpush3.bf16.msra.mxu0 %v3306_v4 }
  0x82   :  { %2396 = vmatprep.subr.mxu0 %v3195_v56 }
  0x85   :  { %2397 = vmatpush3.msra.mxu0 %v3195_v56  ;;  %v1084_v56 = vld [vmem:[%s3780_s2 + $0x10] sm:$0xff] }
  0x86   :  { %2749 = vmatprep.subr.bf16.mxu0 %v3041_v12  ;;  %2399 = vmatmul.mubr.f32.vlgmr.msra.gmra.mrb[0].mxu0 %v3225_v29 }
  0x87   :  { %2751 = vmatpush3.bf16.msra.mxu0 %v3041_v12  ;;  %2401 = vmatprep.mubr.f32.mxu0 %v3235_v59 }
  0x88   :  { %2753 = vmatprep.subr.bf16.mxu0 %v3055_v18 }
  0x8a   :  { %2402 = vmatmul.mubr.f32.gmra.mrb[2].mxu0 %v3237_v63 }
  0x8b   :  { %2755 = vmatpush3.bf16.msra.mxu0 %v3055_v18  ;;  %2404 = vmatprep.mubr.f32.mxu0 %v3239_v0 }
  0x8c   :  { %2757 = vmatprep.subr.bf16.mxu0 %v3084_v34 }
  0x8e   :  { %2405 = vmatmul.mubr.f32.gmra.mrb[4].mxu0 %v3242_v16 }
  0x8f   :  { %2759 = vmatpush3.bf16.msra.mxu0 %v3084_v34  ;;  %2407 = vmatprep.mubr.f32.mxu0 %v3298_v46 }
  0x90   :  { %2761 = vmatprep.subr.bf16.mxu0 %v3125_v60 }
  0x92   :  { %2408 = vmatmul.mubr.f32.gmra.mrb[6].mxu0 %v3332_v52 }
  0x93   :  { %2763 = vmatpush3.bf16.msra.mxu0 %v3125_v60  ;;  %2440 = vmatprep.mubr.f32.mxu0 %v3197_v57  ;;  %v1085_v57 = vld [vmem:[%s3780_s2 + $0x18] sm:$0xff] }
  0x94   :  { %2765 = vmatprep.subr.bf16.mxu0 %v3148_v11 }
  0x97   :  { %2767 = vmatpush3.bf16.msra.mxu0 %v3148_v11 }
  0x98   :  { %2769 = vmatprep.subr.bf16.mxu0 %v3181_v44 }
  0x9b   :  { %2771 = vmatpush3.bf16.msra.mxu0 %v3181_v44  ;;  %v1118_v44 = vand.u32 4294901760, %v1083_v33 }
  0x9c   :  { %2773 = vmatprep.subr.bf16.mxu0 %v3212_v1 }
  0x9d   :  { %v1275_v10 = vsub.f32 %v1083_v33, %v1118_v44 }
  0x9f   :  { %2775 = vmatpush3.bf16.msra.mxu0 %v3212_v1  ;;  %v1121_v1 = vand.u32 4294901760, %v1084_v56  ;;  %v1276_v28 = vand.u32 4294901760, %v1275_v10 }
  0xa0   :  { %2438 = vmatprep.subr.mxu0 %v3171_v39 }
  0xa1   :  { %v1277_v37 = vsub.f32 %v1275_v10, %v1276_v28  ;;  %v1282_v26 = vsub.f32 %v1084_v56, %v1121_v1 }
  0xa3   :  { %2439 = vmatpush3.msra.mxu0 %v3171_v39  ;;  %v1115_v39 = vand.u32 4294901760, %v1082_v27  ;;  %v1278_v25 = vand.u32 4294901760, %v1277_v37  ;;  %v1283_v3 = vand.u32 4294901760, %v1282_v26 }
  0xa4   :  { %2441 = vmatmul.mubr.f32.vlgmr.msra.gmra.mrb[0].mxu0 %v3225_v29  ;;  %v1124_v29 = vand.u32 4294901760, %v1085_v57 }
  0xa5   :  { %2443 = vmatprep.mubr.f32.mxu0 %v3235_v59  ;;  %v3480_v48 = vpack.c.bf16 %v1118_v44, %v1115_v39  ;;  %v1086_v59 = vld [vmem:[%s3780_s2 + $0x20] sm:$0xff]  ;;  %v1268_v7 = vsub.f32 %v1082_v27, %v1115_v39  ;;  %v1284_v5 = vsub.f32 %v1282_v26, %v1283_v3 }
  0xa6   :  { %v3490_v58 = vpack.c.bf16 %v1124_v29, %v1121_v1  ;;  %v1289_v32 = vsub.f32 %v1085_v57, %v1124_v29  ;;  %v1971_v1 = vld [vmem:[%s3778_s0] ss:$0 sm:$0xff] }
  0xa7   :  { %2777 = vmatprep.subr.bf16.mxu1 %v3480_v48  ;;  %v1269_v17 = vand.u32 4294901760, %v1268_v7  ;;  %v1285_v45 = vand.u32 4294901760, %v1284_v5  ;;  %v3521_v15 = vpack.c.bf16 %v1275_v10, %v1268_v7 }
  0xa8   :  { %2444 = vmatmul.mubr.f32.gmra.mrb[2].mxu0 %v3237_v63  ;;  %2779 = vmatpush3.bf16.msra.mxu1 %v3480_v48  ;;  %v1087_v63 = vld [vmem:[%s3780_s2 + $0x28] sm:$0xff]  ;;  %v1290_v4 = vand.u32 4294901760, %v1289_v32  ;;  %v3523_v19 = vpack.c.bf16 %v1289_v32, %v1282_v26 }
  0xa9   :  { %2446 = vmatprep.mubr.f32.mxu0 %v3239_v0  ;;  %2781 = vmatprep.subr.bf16.mxu1 %v3490_v58  ;;  %v1127_v0 = vand.u32 4294901760, %v1086_v59  ;;  %v1270_v51 = vsub.f32 %v1268_v7, %v1269_v17  ;;  %v3527_v55 = vpack.c.bf16 %v1276_v28, %v1269_v17 }
  0xaa   :  { %v1291_v38 = vsub.f32 %v1289_v32, %v1290_v4  ;;  %v3529_v6 = vpack.c.bf16 %v1290_v4, %v1283_v3 }
  0xab   :  { %v1271_v23 = vand.u32 4294901760, %v1270_v51  ;;  %v1296_v41 = vsub.f32 %v1086_v59, %v1127_v0 }
  0xac   :  { %2447 = vmatmul.mubr.f32.gmra.mrb[4].mxu0 %v3242_v16  ;;  %v1130_v16 = vand.u32 4294901760, %v1087_v63  ;;  %2783 = vmatpush3.bf16.msra.mxu1 %v3490_v58  ;;  %v1292_v49 = vand.u32 4294901760, %v1291_v38 }
  0xad   :  { %2449 = vmatprep.mubr.f32.mxu0 %v3298_v46  ;;  %v3514_v46 = vpack.c.bf16 %v1278_v25, %v1271_v23 }
  0xae   :  { %v3500_v53 = vpack.c.bf16 %v1130_v16, %v1127_v0  ;;  %v1303_v43 = vsub.f32 %v1087_v63, %v1130_v16  ;;  %v3517_v14 = vpack.c.bf16 %v1292_v49, %v1285_v45 }
  0xb0   :  { %2450 = vmatmul.mubr.f32.gmra.mrb[6].mxu0 %v3332_v52  ;;  %2785 = vmatprep.subr.bf16.mxu1 %v3500_v53  ;;  %v1297_v52 = vand.u32 4294901760, %v1296_v41  ;;  %v1304_v13 = vand.u32 4294901760, %v1303_v43  ;;  %v3525_v54 = vpack.c.bf16 %v1303_v43, %v1296_v41 }
  0xb1   :  { %2787 = vmatpush3.bf16.msra.mxu1 %v3500_v53 }
  0xb2   :  { %2464 = vmatprep.subr.mxu1 %v3510_v22  ;;  %v1298_v50 = vsub.f32 %v1296_v41, %v1297_v52  ;;  %v1305_v35 = vsub.f32 %v1303_v43, %v1304_v13  ;;  %v3531_v42 = vpack.c.bf16 %v1304_v13, %v1297_v52 }
  0xb4   :  { %v1299_v30 = vand.u32 4294901760, %v1298_v50  ;;  %v1306_v8 = vand.u32 4294901760, %v1305_v35 }
  0xb5   :  { %2465 = vmatpush3.msra.mxu1 %v3510_v22 }
  0xb6   :  { %2789 = vmatprep.subr.bf16.mxu1 %v3514_v46  ;;  %v3519_v31 = vpack.c.bf16 %v1306_v8, %v1299_v30 }
  0xfb   :  { %v3458_v12 = vpop.f32.mrb[0].mxu1 }
  0xfc   :  { %v3460_v18 = vpop.f32.mrb[1].mxu1 }
 0x101   :  { %v3462_v34 = vpop.f32.mrb[2].mxu1 }
 0x102   :  { %v3464_v60 = vpop.f32.mrb[3].mxu1 }
 0x105   :  { %v3466_v62 = vpop.f32.mrb[4].mxu1 }
 0x106   :  { %v3468_v2 = vpop.f32.mrb[5].mxu1 }
 0x109   :  { %v3470_v9 = vpop.f32.mrb[6].mxu1 }
 0x10a   :  { %v3472_v11 = vpop.f32.mrb[7].mxu1 }
 0x177   :  { %v2442_v40 = vpop.f32.mrb[0].mxu0 }
 0x178   :  { %v2848_v20 = vadd.f32 %v2442_v40, %v3458_v12  ;;  %v957_v24 = vpop.f32.mrb[1].mxu0 }
 0x179   :  { %v2849_v36 = vadd.f32 %v957_v24, %v3460_v18 }
 0x17a   :  { %2931 = vrsqrt.f32 %v2848_v20 }
 0x17b   :  { %2933 = vrsqrt.f32 %v2849_v36  ;;  %v2445_v47 = vpop.f32.mrb[2].mxu0 }
 0x17c   :  { %v2850_v61 = vadd.f32 %v2445_v47, %v3462_v34  ;;  %v969_v27 = vpop.f32.mrb[3].mxu0 }
 0x17d   :  { %v2851_v33 = vadd.f32 %v969_v27, %v3464_v60 }
 0x17e   :  { %2935 = vrsqrt.f32 %v2850_v61 }
 0x17f   :  { %2937 = vrsqrt.f32 %v2851_v33  ;;  %v2448_v39 = vpop.f32.mrb[4].mxu0 }
 0x180   :  { %v2852_v44 = vadd.f32 %v2448_v39, %v3466_v62  ;;  %v981_v56 = vpop.f32.mrb[5].mxu0 }
 0x181   :  { %v2853_v57 = vadd.f32 %v981_v56, %v3468_v2 }
 0x182   :  { %2939 = vrsqrt.f32 %v2852_v44 }
 0x183   :  { %2941 = vrsqrt.f32 %v2853_v57  ;;  %v2451_v12 = vpop.f32.mrb[6].mxu0 }
 0x184   :  { %v2932_v18 = vpop.eup %2931  ;;  %v2854_v34 = vadd.f32 %v2451_v12, %v3470_v9  ;;  %v993_v29 = vpop.f32.mrb[7].mxu0 }
 0x185   :  { %v2934_v60 = vpop.eup %2933  ;;  %v1012_v59 = vmul.f32 %v2932_v18, %v2848_v20  ;;  %v2855_v63 = vadd.f32 %v993_v29, %v3472_v11 }
 0x186   :  { %v1011_v0 = vmul.f32 %v2934_v60, %v2849_v36  ;;  %2943 = vrsqrt.f32 %v2854_v34 }
 0x187   :  { %v1027_v62 = vadd.f32 %v1971_v1, %v1012_v59  ;;  %2945 = vrsqrt.f32 %v2855_v63 }
 0x188   :  { %v2936_v2 = vpop.eup %2935  ;;  %v1026_v16 = vadd.f32 %v1971_v1, %v1011_v0 }
 0x189   :  { %v3544_v7 = vpop.eup %2937  ;;  %v1035_v10 = vmul.f32 0.5, %v1027_v62  ;;  %v1014_v17 = vmul.f32 %v2936_v2, %v2850_v61 }
 0x18a   :  { %v1034_v28 = vmul.f32 0.5, %v1026_v16  ;;  %v1013_v51 = vmul.f32 %v3544_v7, %v2851_v33 }
 0x18b   :  { %2947 = vtanh.f32 %v1035_v10  ;;  %v1029_v9 = vadd.f32 %v1971_v1, %v1014_v17 }
 0x18c   :  { %v3547_v37 = vpop.eup %2939  ;;  %2949 = vtanh.f32 %v1034_v28  ;;  %v1028_v23 = vadd.f32 %v1971_v1, %v1013_v51 }
 0x18d   :  { %v3549_v11 = vpop.eup %2941  ;;  %v1037_v25 = vmul.f32 0.5, %v1029_v9  ;;  %v1016_v26 = vmul.f32 %v3547_v37, %v2852_v44 }
 0x18e   :  { %v1036_v32 = vmul.f32 0.5, %v1028_v23  ;;  %v1015_v3 = vmul.f32 %v3549_v11, %v2853_v57 }
 0x18f   :  { %2951 = vtanh.f32 %v1037_v25  ;;  %v1031_v4 = vadd.f32 %v1971_v1, %v1016_v26 }
 0x190   :  { %v3553_v5 = vpop.eup %2943  ;;  %2953 = vtanh.f32 %v1036_v32  ;;  %v1030_v38 = vadd.f32 %v1971_v1, %v1015_v3 }
 0x191   :  { %v3555_v41 = vpop.eup %2945  ;;  %v1039_v43 = vmul.f32 0.5, %v1031_v4  ;;  %v1018_v45 = vmul.f32 %v3553_v5, %v2854_v34 }
 0x192   :  { %v1038_v49 = vmul.f32 0.5, %v1030_v38  ;;  %v1017_v52 = vmul.f32 %v3555_v41, %v2855_v63 }
 0x193   :  { %2955 = vtanh.f32 %v1039_v43  ;;  %v1033_v13 = vadd.f32 %v1971_v1, %v1018_v45 }
 0x194   :  { %2957 = vtanh.f32 %v1038_v49  ;;  %v1032_v50 = vadd.f32 %v1971_v1, %v1017_v52 }
 0x195   :  { %v2948_v35 = vpop.eup %2947  ;;  %v1041_v30 = vmul.f32 0.5, %v1033_v13 }
 0x196   :  { %v2950_v8 = vpop.eup %2949  ;;  %v1051_v40 = vadd.f32 1.0, %v2948_v35  ;;  %v1040_v20 = vmul.f32 0.5, %v1032_v50 }
 0x197   :  { %v1050_v24 = vadd.f32 1.0, %v2950_v8  ;;  %2959 = vtanh.f32 %v1041_v30 }
 0x198   :  { %v1059_v36 = vmul.f32 0.5, %v1051_v40  ;;  %2961 = vtanh.f32 %v1040_v20 }
 0x199   :  { %v2952_v47 = vpop.eup %2951  ;;  %v1058_v61 = vmul.f32 0.5, %v1050_v24 }
 0x19a   :  { %v2954_v27 = vpop.eup %2953  ;;  %v1067_v33 = vmul.f32 %v1059_v36, %v1027_v62  ;;  %v1053_v39 = vadd.f32 1.0, %v2952_v47 }
 0x19b   :  { %v1066_v44 = vmul.f32 %v1058_v61, %v1026_v16  ;;  %v1052_v56 = vadd.f32 1.0, %v2954_v27 }
 0x19c   :  { %v1075_v57 = vmul.f32 %v2932_v18, %v1067_v33  ;;  %v1061_v12 = vmul.f32 0.5, %v1053_v39 }
 0x19d   :  { %v2956_v1 = vpop.eup %2955  ;;  %v1074_v34 = vmul.f32 %v2934_v60, %v1066_v44  ;;  %v1060_v29 = vmul.f32 0.5, %v1052_v56 }
 0x19e   :  { %v2958_v59 = vpop.eup %2957  ;;  %v1094_v63 = vsel %vm1089_vm1, %v1075_v57, 0  ;;  %v1069_v0 = vmul.f32 %v1061_v12, %v1029_v9  ;;  %v1055_v10 = vadd.f32 1.0, %v2956_v1  ;;  %v3571_v9 = vsub.f32 %v3507_v21, %v3510_v22 }
 0x19f   :  { %v3560_v17 = vand.u32 4294901760, %v1094_v63  ;;  %v1068_v28 = vmul.f32 %v1060_v29, %v1028_v23  ;;  %v1054_v51 = vadd.f32 1.0, %v2958_v59  ;;  %v1091_v62 = vsel %vm1089_vm1, %v1074_v34, 0 }
 0x1a0   :  { %v1077_v25 = vmul.f32 %v2936_v2, %v1069_v0  ;;  %v1063_v26 = vmul.f32 0.5, %v1055_v10  ;;  %v3563_v16 = vand.u32 4294901760, %v1091_v62  ;;  %v3601_v44 = vand.u32 4294901760, %v3571_v9 }
 0x1a1   :  { %v2960_v18 = vpop.eup %2959  ;;  %v3566_v32 = vsub.f32 %v1094_v63, %v3560_v17  ;;  %v1076_v60 = vmul.f32 %v3544_v7, %v1068_v28  ;;  %v1062_v3 = vmul.f32 0.5, %v1054_v51 }
 0x1a2   :  { %v2962_v43 = vpop.eup %2961  ;;  %v1071_v23 = vmul.f32 %v1063_v26, %v1031_v4  ;;  %v1057_v45 = vadd.f32 1.0, %v2960_v18  ;;  %v3574_v49 = vsub.f32 %v1091_v62, %v3563_v16  ;;  %v1100_v2 = vsel %vm1089_vm1, %v1077_v25, 0 }
 0x1a3   :  { %v1070_v52 = vmul.f32 %v1062_v3, %v1030_v38  ;;  %v1056_v35 = vadd.f32 1.0, %v2962_v43  ;;  %v1198_v30 = vand.u32 4294901760, %v3566_v32  ;;  %v1097_v8 = vsel %vm1089_vm1, %v1076_v60, 0 }
 0x1a4   :  { %v1079_v7 = vmul.f32 %v3547_v37, %v1071_v23  ;;  %v1065_v40 = vmul.f32 0.5, %v1057_v45  ;;  %v1188_v21 = vand.u32 4294901760, %v3574_v49  ;;  %v3581_v20 = vand.u32 4294901760, %v1097_v8 }
 0x1a5   :  { %v1078_v4 = vmul.f32 %v3549_v11, %v1070_v52  ;;  %v1064_v24 = vmul.f32 0.5, %v1056_v35  ;;  %v1199_v36 = vsub.f32 %v3566_v32, %v1198_v30  ;;  %v3587_v38 = vand.u32 4294901760, %v1100_v2 }
 0x1a6   :  { %v1073_v47 = vmul.f32 %v1065_v40, %v1033_v13  ;;  %v1189_v61 = vsub.f32 %v3574_v49, %v1188_v21  ;;  %v3593_v37 = vsub.f32 %v1097_v8, %v3581_v20  ;;  %v1106_v27 = vsel %vm1089_vm1, %v1079_v7, 0 }
 0x1a7   :  { %v1072_v33 = vmul.f32 %v1064_v24, %v1032_v50  ;;  %v3597_v11 = vsub.f32 %v1100_v2, %v3587_v38  ;;  %v1103_v39 = vsel %vm1089_vm1, %v1078_v4, 0  ;;  %v1200_v34 = vand.u32 4294901760, %v1199_v36 }
 0x1a8   :  { %v1081_v13 = vmul.f32 %v3553_v5, %v1073_v47  ;;  %v1190_v56 = vand.u32 4294901760, %v1189_v61  ;;  %v1208_v57 = vand.u32 4294901760, %v3593_v37  ;;  %v3605_v12 = vand.u32 4294901760, %v1103_v39  ;;  %v2970_v47 = vld [vmem:[%s3781_s3 + $0x30] sm:$0xff] }
 0x1a9   :  { %v1080_v1 = vmul.f32 %v3555_v41, %v1072_v33  ;;  %v1218_v50 = vand.u32 4294901760, %v3597_v11  ;;  %v3609_v29 = vand.u32 4294901760, %v1106_v27  ;;  %v1312_v3 = vsub.f32 %v3571_v9, %v3601_v44 }
 0x1aa   :  { %2466 = vmatprep.mubr.f32.mxu1 %v1190_v56  ;;  %v1209_v59 = vsub.f32 %v3593_v37, %v1208_v57  ;;  %v3615_v63 = vsub.f32 %v1103_v39, %v3605_v12  ;;  %v1112_v5 = vsel %vm1089_vm1, %v1081_v13, 0 }
 0x1ab   :  { %2467 = vmatmul.mubr.f32.vlgmr.msra.gmra.mrb[8].mxu1 %v1200_v34  ;;  %v1219_v41 = vsub.f32 %v3597_v11, %v1218_v50  ;;  %v3622_v0 = vsub.f32 %v1106_v27, %v3609_v29  ;;  %v1109_v10 = vsel %vm1089_vm1, %v1080_v1, 0  ;;  %v3625_v28 = vand.u32 4294901760, %v1112_v5 }
 0x1ac   :  { %2791 = vmatpush3.bf16.msra.mxu1 %v3514_v46  ;;  %v1210_v51 = vand.u32 4294901760, %v1209_v59  ;;  %v1228_v62 = vand.u32 4294901760, %v3615_v63  ;;  %v3629_v25 = vand.u32 4294901760, %v1109_v10  ;;  %v1313_v7 = vand.u32 4294901760, %v1312_v3 }
 0x1ad   :  { %v1220_v26 = vand.u32 4294901760, %v1219_v41  ;;  %2793 = vmatprep.subr.bf16.mxu1 %v3517_v14  ;;  %v1238_v18 = vand.u32 4294901760, %v3622_v0  ;;  %v3634_v60 = vsub.f32 %v1112_v5, %v3625_v28 }
 0x1ae   :  { %2469 = vmatprep.mubr.f32.mxu1 %v1210_v51  ;;  %v1229_v46 = vsub.f32 %v3615_v63, %v1228_v62  ;;  %v3642_v43 = vsub.f32 %v1109_v10, %v3629_v25 }
 0x1af   :  { %2470 = vmatmul.mubr.f32.gmra.mrb[10].mxu1 %v1220_v26  ;;  %v1239_v23 = vsub.f32 %v3622_v0, %v1238_v18  ;;  %v1258_v45 = vand.u32 4294901760, %v3634_v60 }
 0x1b0   :  { %2795 = vmatpush3.bf16.msra.mxu1 %v3517_v14  ;;  %v1230_v2 = vand.u32 4294901760, %v1229_v46  ;;  %v1248_v52 = vand.u32 4294901760, %v3642_v43  ;;  %v2964_v14 = vld [vmem:[%s3781_s3] sm:$0xff] }
 0x1b1   :  { %v1240_v35 = vand.u32 4294901760, %v1239_v23  ;;  %2797 = vmatprep.subr.bf16.mxu1 %v3519_v31  ;;  %v1259_v8 = vsub.f32 %v3634_v60, %v1258_v45 }
 0x1b2   :  { %2472 = vmatprep.mubr.f32.mxu1 %v1230_v2  ;;  %v1249_v40 = vsub.f32 %v3642_v43, %v1248_v52 }
 0x1b3   :  { %2473 = vmatmul.mubr.f32.gmra.mrb[12].mxu1 %v1240_v35  ;;  %v1260_v24 = vand.u32 4294901760, %v1259_v8 }
 0x1b4   :  { %2799 = vmatpush3.bf16.msra.mxu1 %v3519_v31  ;;  %v1250_v4 = vand.u32 4294901760, %v1249_v40 }
 0x1b5   :  { %2490 = vmatprep.subr.mxu1 %v1313_v7 }
 0x1b6   :  { %2475 = vmatprep.mubr.f32.mxu1 %v1250_v4 }
 0x1b7   :  { %2476 = vmatmul.mubr.f32.gmra.mrb[14].mxu1 %v1260_v24 }
 0x1b8   :  { %2491 = vmatpush3.msra.mxu1 %v1313_v7  ;;  %2492 = vmatprep.mubr.f32.mxu1 %v3563_v16 }
 0x1b9   :  { %2801 = vmatprep.subr.bf16.mxu1 %v3521_v15 }
 0x1bb   :  { %2493 = vmatmul.mubr.f32.vlgmr.msra.gmra.mrb[8].mxu1 %v3560_v17 }
 0x1bc   :  { %2495 = vmatprep.mubr.f32.mxu1 %v3581_v20  ;;  %2803 = vmatpush3.bf16.msra.mxu1 %v3521_v15 }
 0x1bd   :  { %2805 = vmatprep.subr.bf16.mxu1 %v3523_v19 }
 0x1bf   :  { %2496 = vmatmul.mubr.f32.gmra.mrb[10].mxu1 %v3587_v38 }
 0x1c0   :  { %2498 = vmatprep.mubr.f32.mxu1 %v3605_v12  ;;  %2807 = vmatpush3.bf16.msra.mxu1 %v3523_v19  ;;  %v2965_v19 = vld [vmem:[%s3781_s3 + $0x18] sm:$0xff] }
 0x1c1   :  { %2809 = vmatprep.subr.bf16.mxu1 %v3525_v54 }
 0x1c3   :  { %2499 = vmatmul.mubr.f32.gmra.mrb[12].mxu1 %v3609_v29 }
 0x1c4   :  { %2501 = vmatprep.mubr.f32.mxu1 %v3629_v25  ;;  %2811 = vmatpush3.bf16.msra.mxu1 %v3525_v54 }
 0x1c5   :  { %2516 = vmatprep.subr.mxu1 %v3571_v9 }
 0x1c7   :  { %2502 = vmatmul.mubr.f32.gmra.mrb[14].mxu1 %v3625_v28 }
 0x1c8   :  { %2517 = vmatpush3.msra.mxu1 %v3571_v9  ;;  %2518 = vmatprep.mubr.f32.mxu1 %v3574_v49  ;;  %v2968_v49 = vld [vmem:[%s3781_s3 + $0x20] sm:$0xff] }
 0x1c9   :  { %2813 = vmatprep.subr.bf16.mxu1 %v3480_v48 }
 0x1cb   :  { %2519 = vmatmul.mubr.f32.vlgmr.msra.gmra.mrb[8].mxu1 %v3566_v32 }
 0x1cc   :  { %2521 = vmatprep.mubr.f32.mxu1 %v3593_v37  ;;  %2815 = vmatpush3.bf16.msra.mxu1 %v3480_v48 }
 0x1cd   :  { %2817 = vmatprep.subr.bf16.mxu1 %v3490_v58 }
 0x1cf   :  { %2522 = vmatmul.mubr.f32.gmra.mrb[10].mxu1 %v3597_v11 }
 0x1d0   :  { %2524 = vmatprep.mubr.f32.mxu1 %v3615_v63  ;;  %2819 = vmatpush3.bf16.msra.mxu1 %v3490_v58 }
 0x1d1   :  { %2821 = vmatprep.subr.bf16.mxu1 %v3500_v53 }
 0x1d3   :  { %2525 = vmatmul.mubr.f32.gmra.mrb[12].mxu1 %v3622_v0 }
 0x1d4   :  { %2527 = vmatprep.mubr.f32.mxu1 %v3642_v43  ;;  %2823 = vmatpush3.bf16.msra.mxu1 %v3500_v53 }
 0x1d5   :  { %2542 = vmatprep.subr.mxu1 %v3510_v22 }
 0x1d7   :  { %2528 = vmatmul.mubr.f32.gmra.mrb[14].mxu1 %v3634_v60 }
 0x1d8   :  { %2543 = vmatpush3.msra.mxu1 %v3510_v22  ;;  %2544 = vmatprep.mubr.f32.mxu1 %v1188_v21 }
 0x1d9   :  { %2825 = vmatprep.subr.bf16.mxu1 %v3527_v55 }
 0x1db   :  { %2545 = vmatmul.mubr.f32.vlgmr.msra.gmra.mrb[8].mxu1 %v1198_v30 }
 0x1dc   :  { %2547 = vmatprep.mubr.f32.mxu1 %v1208_v57  ;;  %2827 = vmatpush3.bf16.msra.mxu1 %v3527_v55 }
 0x1dd   :  { %2829 = vmatprep.subr.bf16.mxu1 %v3529_v6 }
 0x1df   :  { %2548 = vmatmul.mubr.f32.gmra.mrb[10].mxu1 %v1218_v50 }
 0x1e0   :  { %2550 = vmatprep.mubr.f32.mxu1 %v1228_v62  ;;  %2831 = vmatpush3.bf16.msra.mxu1 %v3529_v6  ;;  %v2966_v6 = vld [vmem:[%s3781_s3 + $0x10] sm:$0xff] }
 0x1e1   :  { %2833 = vmatprep.subr.bf16.mxu1 %v3531_v42 }
 0x1e3   :  { %2551 = vmatmul.mubr.f32.gmra.mrb[12].mxu1 %v1238_v18 }
 0x1e4   :  { %2553 = vmatprep.mubr.f32.mxu1 %v1248_v52  ;;  %2835 = vmatpush3.bf16.msra.mxu1 %v3531_v42 }
 0x1e5   :  { %2568 = vmatprep.subr.mxu1 %v3601_v44 }
 0x1e7   :  { %2554 = vmatmul.mubr.f32.gmra.mrb[14].mxu1 %v1258_v45 }
 0x1e8   :  { %2569 = vmatpush3.msra.mxu1 %v3601_v44  ;;  %2570 = vmatprep.mubr.f32.mxu1 %v3563_v16 }
 0x1e9   :  { %2837 = vmatprep.subr.bf16.mxu1 %v3480_v48 }
 0x1eb   :  { %2571 = vmatmul.mubr.f32.vlgmr.msra.gmra.mrb[8].mxu1 %v3560_v17 }
 0x1ec   :  { %2573 = vmatprep.mubr.f32.mxu1 %v3581_v20  ;;  %2839 = vmatpush3.bf16.msra.mxu1 %v3480_v48 }
 0x1ed   :  { %2841 = vmatprep.subr.bf16.mxu1 %v3490_v58 }
 0x1ef   :  { %2574 = vmatmul.mubr.f32.gmra.mrb[10].mxu1 %v3587_v38 }
 0x1f0   :  { %2576 = vmatprep.mubr.f32.mxu1 %v3605_v12  ;;  %2843 = vmatpush3.bf16.msra.mxu1 %v3490_v58  ;;  %v2963_v58 = vld [vmem:[%s3781_s3 + $0x8] sm:$0xff] }
 0x1f1   :  { %2845 = vmatprep.subr.bf16.mxu1 %v3500_v53 }
 0x1f3   :  { %2577 = vmatmul.mubr.f32.gmra.mrb[12].mxu1 %v3609_v29 }
 0x1f4   :  { %2579 = vmatprep.mubr.f32.mxu1 %v3629_v25  ;;  %2847 = vmatpush3.bf16.msra.mxu1 %v3500_v53 }
 0x1f5   :  { %2594 = vmatprep.subr.mxu1 %v3510_v22 }
 0x1f7   :  { %2580 = vmatmul.mubr.f32.gmra.mrb[14].mxu1 %v3625_v28 }
 0x1f8   :  { %2595 = vmatpush3.msra.mxu1 %v3510_v22  ;;  %2596 = vmatprep.mubr.f32.mxu1 %v3563_v16  ;;  %v2967_v16 = vld [vmem:[%s3781_s3 + $0x28] sm:$0xff] }
 0x1fb   :  { %2597 = vmatmul.mubr.f32.vlgmr.msra.gmra.mrb[8].mxu1 %v3560_v17 }
 0x1fc   :  { %2599 = vmatprep.mubr.f32.mxu1 %v3581_v20  ;;  %v2969_v20 = vld [vmem:[%s3781_s3 + $0x38] sm:$0xff] }
 0x1ff   :  { %2600 = vmatmul.mubr.f32.gmra.mrb[10].mxu1 %v3587_v38 }
 0x200   :  { %2602 = vmatprep.mubr.f32.mxu1 %v3605_v12 }
 0x203   :  { %2603 = vmatmul.mubr.f32.gmra.mrb[12].mxu1 %v3609_v29 }
 0x204   :  { %2605 = vmatprep.mubr.f32.mxu1 %v3629_v25 }
 0x207   :  { %2606 = vmatmul.mubr.f32.gmra.mrb[14].mxu1 %v3625_v28 }
 0x2ce   :  { %v2598_v48 = vpop.f32.mrb[8].mxu1 }
 0x2cf   :  { %v1940_v53 = vmul.f32 %v2963_v58, %v2598_v48  ;;  %v1893_v22 = vpop.f32.mrb[9].mxu1 }
 0x2d0   :  { %v1939_v31 = vmul.f32 %v2964_v14, %v1893_v22 }
 0x2d1   :  { %1948 = vst.msk [vmem:[#allocation2 + $0x8] sm:$0xff] %vm49_vm0, %v1940_v53 }
 0x2d2   :  { %1947 = vst.msk [vmem:[#allocation2] sm:$0xff] %vm49_vm0, %v1939_v31  ;;  %v2601_v15 = vpop.f32.mrb[10].mxu1 }
 0x2d3   :  { %v1942_v54 = vmul.f32 %v2965_v19, %v2601_v15  ;;  %v1905_v55 = vpop.f32.mrb[11].mxu1 }
 0x2d4   :  { %v1941_v42 = vmul.f32 %v2966_v6, %v1905_v55 }
 0x2d5   :  { %1950 = vst.msk [vmem:[#allocation2 + $0x18] sm:$0xff] %vm49_vm0, %v1942_v54 }
 0x2d6   :  { %1949 = vst.msk [vmem:[#allocation2 + $0x10] sm:$0xff] %vm49_vm0, %v1941_v42  ;;  %v2604_v17 = vpop.f32.mrb[12].mxu1 }
 0x2d7   :  { %v1944_v32 = vmul.f32 %v2967_v16, %v2604_v17  ;;  %v1917_v9 = vpop.f32.mrb[13].mxu1 }
 0x2d8   :  { %v1943_v30 = vmul.f32 %v2968_v49, %v1917_v9 }
 0x2d9   :  { %1952 = vst.msk [vmem:[#allocation2 + $0x28] sm:$0xff] %vm49_vm0, %v1944_v32 }
 0x2da   :  { %1951 = vst.msk [vmem:[#allocation2 + $0x20] sm:$0xff] %vm49_vm0, %v1943_v30  ;;  %v2607_v21 = vpop.f32.mrb[14].mxu1 }
 0x2db   :  { %v1946_v36 = vmul.f32 %v2969_v20, %v2607_v21  ;;  %v1929_v38 = vpop.f32.mrb[15].mxu1 }
 0x2dc   :  { %v1945_v61 = vmul.f32 %v2970_v47, %v1929_v38 }
 0x2dd   :  { %1954 = vst.msk [vmem:[#allocation2 + $0x38] sm:$0xff] %vm49_vm0, %v1946_v36 }
 0x2de   :  { %1953 = vst.msk [vmem:[#allocation2 + $0x30] sm:$0xff] %vm49_vm0, %v1945_v61 }
 0x2df   :  { %2982 = shalt.err (!%p2979_p4)
}
 0x2e0   :  { %s2983_s16 = scalar_lea.hbm %s3782_s4, 1024 }
 0x2e1   :  { %p2984_p5 = scmp.ne.s32.totalorder %s3782_s4, %s2983_s16  ;;  %p2987_p6 = scmp.lt.u32.totalorder %s2983_s16, %s3782_s4 }
 0x2e3   :  { %p2989_p7 = pnand %p2987_p6, %p2984_p5 }
 0x2e5   :  { %2992 = shalt.err (!%p2989_p7)
}
 0x2e6   :  { %s2996_s20 = smov 128   ;;  %s2997_s1 = smov 8  }
 0x2e7   :  { %1966 = dma.vmem_to_hbm [thread:$0]  %s1961_s8, 1024, %s3782_s4, [#allocation3], %s2996_s20, %s2996_s20, %s2997_s1  }
 0x2e8   :  { %2993 = dma.done.wait [#allocation3], 1024  }
 0x2e9   :  { %2994 = vsyncadd [#allocation3], 4294966272 }
 0x2ea   :  { %1970 = vsyncpa [#allocation3], 1 }

</bundles_post_ra>
